<compile_context>
chip_gen: v7x
topology: tpu7x:2x2x1
jax: 0.10.0
libtpu: 0.0.40
codegen_flags: <defaults>
</compile_context>

<pallas_src>
import functools

import jax
import jax.numpy as jnp
from jax.experimental import pallas as pl
from jax.experimental.pallas import tpu as pltpu

IN_FEATURES = 23
OUT_FEATURES = 2
N_OUT = 2 * OUT_FEATURES          # concatenated output width (4)
MAX_TILE_B = 512                  # rows per grid step for large batches


def _fused_linear_hsigmoid_kernel(x_ref, w_ref, b_ref, o_ref):
    # x_ref: (tile_b, 23)  activations (real width; Mosaic lane-pads in VMEM)
    # w_ref: (23, 4)       folded weight  [Wt | Wt @ W2t]
    # b_ref: (1, 4)        folded bias    [b  | b @ W2t + b]
    # o_ref: (tile_b, 4)   output (edge rows masked by Pallas)
    acc = jnp.dot(x_ref[...], w_ref[...], preferred_element_type=jnp.float32)
    acc = acc + b_ref[...]
    o_ref[...] = (jnp.clip(acc + 3.0, 0.0, 6.0) * (1.0 / 6.0)).astype(o_ref.dtype)


def prepare_params(weight, bias):
    """Fold the two linear applications into one (23, 4) matmul.

    weight: (2, 23) f32 (PyTorch layout), bias: (2,) f32.
    Returns (w_comb (23, 4), b_comb (1, 4)).  Call once, reuse.
    """
    wt = weight.T.astype(jnp.float32)                       # (23, 2)
    w2t = weight[:, :OUT_FEATURES].T.astype(jnp.float32)    # (2, 2)
    b = bias.astype(jnp.float32)                             # (2,)

    w_comb = jnp.concatenate([wt, wt @ w2t], axis=1)          # (23, 4)
    b_comb = jnp.concatenate([b, b @ w2t + b], axis=0)[None]  # (1, 4)
    return w_comb, b_comb


@functools.partial(jax.jit, static_argnames=())
def model_forward(x, w_comb, b_comb):
    """x: (B, 23) f32 -> (B, 4) f32."""
    B = x.shape[0]
    # Round batch tile up to the 8-sublane minimum; cap so large batches get
    # multiple (parallel) grid steps instead of one giant block.
    tile_b = min(((B + 7) // 8) * 8, MAX_TILE_B)
    grid = (pl.cdiv(B, tile_b),)

    return pl.pallas_call(
        _fused_linear_hsigmoid_kernel,
        out_shape=jax.ShapeDtypeStruct((B, N_OUT), jnp.float32),
        grid=grid,
        in_specs=[
            pl.BlockSpec((tile_b, IN_FEATURES), lambda i: (i, 0)),
            pl.BlockSpec((IN_FEATURES, N_OUT), lambda i: (0, 0)),
            pl.BlockSpec((1, N_OUT), lambda i: (0, 0)),
        ],
        out_specs=pl.BlockSpec((tile_b, N_OUT), lambda i: (i, 0)),
        compiler_params=pltpu.CompilerParams(
            dimension_semantics=("parallel",)),
    )(x.astype(jnp.float32), w_comb, b_comb)


def _reference(x, weight, bias):
    v1 = x @ weight.T + bias
    v2 = v1 @ weight[:, :OUT_FEATURES].T + bias
    return jnp.clip(jnp.concatenate([v1, v2], axis=1) + 3.0, 0.0, 6.0) / 6.0


if __name__ == "__main__":
    key = jax.random.PRNGKey(0)
    k_x, k_x2, k_w, k_b = jax.random.split(key, 4)

    # Deterministic init mimicking nn.Linear default: U(-1/sqrt(fan_in), ...)
    bound = 1.0 / (IN_FEATURES ** 0.5)
    weight = jax.random.uniform(
        k_w, (OUT_FEATURES, IN_FEATURES), jnp.float32, -bound, bound)
    bias = jax.random.uniform(
        k_b, (OUT_FEATURES,), jnp.float32, -bound, bound)

    # One-time parameter preparation (folded weights, real shapes).
    w_comb, b_comb = prepare_params(weight, bias)
    w_comb = jax.block_until_ready(w_comb)
    b_comb = jax.block_until_ready(b_comb)

    # Shape per the module spec: x1 = torch.randn(1, 23)
    x1 = jax.random.normal(k_x, (1, IN_FEATURES), jnp.float32)
    out = jax.block_until_ready(model_forward(x1, w_comb, b_comb))
    ref = _reference(x1, weight, bias)
    assert out.shape == (1, N_OUT), out.shape
    assert jnp.allclose(out, ref, atol=1e-5, rtol=1e-5), (out, ref)

    # Also exercise a multi-tile / edge-masked batch path.
    xb = jax.random.normal(k_x2, (300, IN_FEATURES), jnp.float32)
    outb = jax.block_until_ready(model_forward(xb, w_comb, b_comb))
    refb = _reference(xb, weight, bias)
    assert outb.shape == (300, N_OUT), outb.shape
    assert jnp.allclose(outb, refb, atol=1e-5, rtol=1e-5)

    print("KERNEL_OK")
</pallas_src>

<mosaic_0001>
module attributes {stable_mosaic.version = 11 : i64} {
  func.func @_fused_linear_hsigmoid_kernel(%arg0: i32, %arg1: memref<8x23xf32, #tpu.memory_space<vmem>>, %arg2: memref<23x4xf32, #tpu.memory_space<vmem>>, %arg3: memref<1x4xf32, #tpu.memory_space<vmem>>, %arg4: memref<8x4xf32, #tpu.memory_space<vmem>>) attributes {dimension_semantics = [#tpu.dimension_semantics<parallel>], iteration_bounds = array<i64: 1>, scalar_prefetch = 0 : i64, scratch_operands = 0 : i64, tpu.core_type = #tpu.core_type<tc>, window_params = [{transform_indices = @transform_0, window_bounds = array<i64: 8, 23>}, {pipeline_mode = #tpu.pipeline_mode<synchronous>, transform_indices = @transform_1, window_bounds = array<i64: 23, 4>}, {pipeline_mode = #tpu.pipeline_mode<synchronous>, transform_indices = @transform_2, window_bounds = array<i64: 1, 4>}, {transform_indices = @transform_3, window_bounds = array<i64: 8, 4>}]} {
    %c0 = arith.constant 0 : index
    %c0_0 = arith.constant 0 : index
    %0 = vector.load %arg1[%c0, %c0_0] : memref<8x23xf32, #tpu.memory_space<vmem>>, vector<8x23xf32>
    %c0_1 = arith.constant 0 : index
    %c0_2 = arith.constant 0 : index
    %1 = vector.load %arg2[%c0_1, %c0_2] : memref<23x4xf32, #tpu.memory_space<vmem>>, vector<23x4xf32>
    %cst = arith.constant dense<0.000000e+00> : vector<8x4xf32>
    %2 = tpu.matmul %0, %1, %cst {dimension_numbers = #tpu.dot_dimension_numbers<[1], [0], [0], [1], [0, 0, 1, 1], [], []>} : vector<8x23xf32>, vector<23x4xf32>, vector<8x4xf32> -> vector<8x4xf32>
    %c0_3 = arith.constant 0 : index
    %c0_4 = arith.constant 0 : index
    %3 = vector.load %arg3[%c0_3, %c0_4] : memref<1x4xf32, #tpu.memory_space<vmem>>, vector<1x4xf32>
    %4 = vector.broadcast %3 : vector<1x4xf32> to vector<8x4xf32>
    %5 = arith.addf %2, %4 : vector<8x4xf32>
    %cst_5 = arith.constant 3.000000e+00 : f32
    %6 = vector.broadcast %cst_5 : f32 to vector<8x4xf32>
    %7 = arith.addf %5, %6 : vector<8x4xf32>
    %cst_6 = arith.constant 0.000000e+00 : f32
    %cst_7 = arith.constant 6.000000e+00 : f32
    %8 = vector.broadcast %cst_6 : f32 to vector<8x4xf32>
    %9 = arith.maximumf %8, %7 : vector<8x4xf32>
    %10 = vector.broadcast %cst_7 : f32 to vector<8x4xf32>
    %11 = arith.minimumf %10, %9 : vector<8x4xf32>
    %cst_8 = arith.constant 0.166666672 : f32
    %12 = vector.broadcast %cst_8 : f32 to vector<8x4xf32>
    %13 = arith.mulf %11, %12 : vector<8x4xf32>
    %c0_9 = arith.constant 0 : index
    %c0_10 = arith.constant 0 : index
    %14 = vector.load %arg4[%c0_9, %c0_10] : memref<8x4xf32, #tpu.memory_space<vmem>>, vector<8x4xf32>
    tpu.vector_store %arg4[%c0_9, %c0_10], %13 {strides = array<i32>} : memref<8x4xf32, #tpu.memory_space<vmem>>, vector<8x4xf32>,
    return
  }
  func.func @transform_0(%arg0: i32) -> (i32, i32) {
    %c0_i32 = arith.constant 0 : i32
    %c0_i32_0 = arith.constant 0 : i32
    return %arg0, %c0_i32 : i32, i32
  }
  func.func @transform_1(%arg0: i32) -> (i32, i32) {
    %c0_i32 = arith.constant 0 : i32
    %c0_i32_0 = arith.constant 0 : i32
    %c0_i32_1 = arith.constant 0 : i32
    return %c0_i32, %c0_i32_0 : i32, i32
  }
  func.func @transform_2(%arg0: i32) -> (i32, i32) {
    %c0_i32 = arith.constant 0 : i32
    %c0_i32_0 = arith.constant 0 : i32
    %c0_i32_1 = arith.constant 0 : i32
    return %c0_i32, %c0_i32_0 : i32, i32
  }
  func.func @transform_3(%arg0: i32) -> (i32, i32) {
    %c0_i32 = arith.constant 0 : i32
    %c0_i32_0 = arith.constant 0 : i32
    return %arg0, %c0_i32 : i32, i32
  }
}

</mosaic_0001>

<bundles_post_ra>
// kernel: model_forward.1
= control target key start
LH: loop header
LB: loop body
LE: loop exit
PB: predicated region body
PF: predicated region fallthrough
CT: control target
= control target key end

     0   :  { %8 = vsyncpa [#allocation3], 0  ;;  %v175_v2 = vmov 0.0|0.0   ;;  %vm176_vm0 = vmmov 0   ;;  %v177_v4 = vmov 0.0   ;;  %vm30_vm1 = vcmask 1046528   ;;  %s228_s0 = inlined_call_operand.vmem [shape: f32[1,23], index: 0, kind: input, shape index: {}]   ;;  %s229_s1 = inlined_call_operand.vmem [shape: f32[23,4], index: 1, kind: input, shape index: {}]   ;;  %s230_s2 = inlined_call_operand.vmem [shape: f32[1,4], index: 2, kind: input, shape index: {}]   ;;  %s231_s3 = inlined_call_operand.hbm [shape: f32[1,4], index: 3, kind: output, shape index: {}]  }
   0x1   :  { %v16_v0 = vld [vmem:[%s229_s1] sm:$0xff]  ;;  %v17_v1 = vld [vmem:[%s229_s1 + $0x8] sm:$0xff]  ;;  %142 = vmatprep.subr.bf16.mxu0 %v175_v2  ;;  %139 = vmatprep.mubr.msk.f32.mxu0 %vm176_vm0, %v177_v4  ;;  %v18_v5 = vld [vmem:[%s229_s1 + $0x10] sm:$0x7f]  ;;  %vm26_vm2 = vcmask 187392   ;;  %vm108_vm3 = vcmask 31744  }
   0x2   :  { %v143_v3 = vpack.c.bf16 %v17_v1, %v16_v0  ;;  %v15_v6 = vld [vmem:[%s228_s0] sm:$0xff] }
   0x3   :  { %v126_v7 = vld [vmem:[%s230_s2] ss:$0 sm:$0xff] }
   0x4   :  { %144 = vmatpush3.bf16.msra.mxu0 %v143_v3 }
   0x5   :  { %137 = vmatprep.subr.mxu0 %v177_v4 }
   0x8   :  { %138 = vmatpush3.msk.msra.mxu0 %vm30_vm1, %v18_v5 }
   0x9   :  { %140 = vmatmul.mubr.msk.f32.vlgmr.msra.gmra.mrb[0].mxu0 %vm26_vm2, %v15_v6 }
  0xdc   :  { %v100_v8 = vpop.f32.mrb[0].mxu0 }
  0xdd   :  { %v101_v9 = vadd.f32 %v126_v7, %v100_v8  ;;  %v141_v10 = vpop.f32.mrb[1].mxu0 }
  0xdf   :  { %v104_v11 = vadd.f32 3.0, %v101_v9 }
  0xe1   :  { %v105_v12 = vmax.f32 %v104_v11, 0.0 }
  0xe3   :  { %v106_v13 = vmin.f32 %v105_v12, 6.0 }
  0xe5   :  { %v107_v14 = vmul.f32 0.16666667, %v106_v13 }
  0xe7   :  { %109 = vst.msk [vmem:[#allocation2] sm:$0xff] %vm108_vm3, %v107_v14 }
  0xe8   :  { %114 = vsyncadd [#allocation3], 112  ;;  %s178_s1 = smov [#allocation2]  }
  0xe9   :  { %s115_s22 = sshll.u32 %s178_s1, 4  ;;  %s116_s22 = int_to_ptr.vmem [resolvable:$true] %s115_s22 }
  0xea   :  { %s151_s0 = scalar_lea.vmem %s116_s22, 16  ;;  %s155_s23 = scalar_lea.vmem %s116_s22, 128 }
  0xeb   :  { %p152_p0 = scmp.ne.s32.totalorder %s116_s22, %s151_s0  ;;  %p156_p1 = scmp.lt.s32.totalorder %s116_s22, %s116_s22 }
  0xec   :  { %p157_p2 = scmp.lt.s32.totalorder %s155_s23, %s151_s0 }
  0xee   :  { %p158_p3 = por %p157_p2, %p156_p1 }
  0xf0   :  { %p159_p4 = pnand %p158_p3, %p152_p0 }
  0xf2   :  { %162 = shalt.err (!%p159_p4)
}
  0xf3   :  { %s163_s25 = scalar_lea.hbm %s231_s3, 16 }
  0xf4   :  { %p164_p5 = scmp.ne.s32.totalorder %s231_s3, %s163_s25  ;;  %p167_p6 = scmp.lt.u32.totalorder %s163_s25, %s231_s3 }
  0xf6   :  { %p169_p7 = pnand %p167_p6, %p164_p5 }
  0xf8   :  { %172 = shalt.err (!%p169_p7)
}
  0xf9   :  { %s179_s30 = smov 16   ;;  %s180_s4 = smov 1  }
  0xfa   :  { %121 = dma.vmem_to_hbm [thread:$0]  %s116_s22, 16, %s231_s3, [#allocation3], %s179_s30, %s179_s30, %s180_s4  }
  0xfb   :  { %173 = dma.done.wait [#allocation3], 128  }
  0xfc   :  { %174 = vsyncadd [#allocation3], 4294967168 }
  0xfd   :  { %125 = vsyncpa [#allocation3], 1 }

</bundles_post_ra>
